<compile_context>
chip_gen: v6e
topology: v6e:2x2x1
jax: 0.10.0
libtpu: 0.0.40
codegen_flags: <defaults>
</compile_context>

<pallas_src>
import numpy as np
import jax
import jax.numpy as jnp
from jax import lax
from jax.experimental import pallas as pl
from jax.experimental.pallas import tpu as pltpu

LANES = 128
SUBLANES = 8


def _round_up(a, b):
    return (a + b - 1) // b * b


def _device_kind():
    try:
        return jax.devices()[0].device_kind.lower()
    except Exception:
        return ""


def _num_tensorcores(kind):
    # 2-way "parallel" split only pays off on multi-TensorCore v7x; on
    # single-TC v5e/v6e it just adds a wasted (masked) overflow tile.
    return 2 if ("v7" in kind or "7x" in kind) else 1


def _default_block_rows(kind, itemsize):
    if "v7" in kind or "7x" in kind:
        rows = 8192   # 4 MiB/input f32 block; per-step overhead ~< 10%
    elif "v6" in kind:
        rows = 8192
    elif "v5" in kind:
        rows = 4096
    else:
        rows = 4096   # unknown backend: stay conservative
    # bf16/fp8 inputs move fewer HBM bytes per row (cast happens in-kernel);
    # scale rows so the per-step DMA size / overhead amortization is constant.
    if itemsize < 4:
        rows *= 4 // itemsize
    return rows


def _vmem_cap(kind):
    # v7x: 64 MiB physical VMEM per TensorCore; v5e/v6e: 128 MiB.
    if "v7" in kind or "7x" in kind:
        return 48 << 20
    if "v5" in kind or "v6" in kind:
        return 100 << 20
    return 32 << 20


def _vmem_estimate(block_rows, itemsize):
    in_blk = block_rows * LANES * itemsize
    f32_blk = block_rows * LANES * 4
    # 2 inputs x 2 pipeline buffers + ~4 live f32 intermediates + slack.
    return 2 * 2 * in_blk + 4 * f32_blk + (1 << 20)


def _make_kernel(p, degrees, block_rows, tiles_per_split, rows, mask_needed):
    # Fold deg2rad into the half-angle factor: 1 - cos(d) == 2*sin(d/2)**2.
    half = np.float32(0.5 * np.pi / 180.0) if degrees else np.float32(0.5)
    two = np.float32(2.0)

    def apply_p(v):
        if isinstance(p, int) and p >= 1:
            if p == 1:
                return v
            if p == 2:
                return v * v
            if p == 3:
                return v * v * v
            if p == 4:
                v2 = v * v
                return v2 * v2      # two squarings instead of three chained muls
            return v ** p
        return v if p == 1 else v ** p

    def reduce_tile(vals):
        # (block_rows, 128) -> (8, 128): tile-aligned reshape (free) followed
        # by leading-axis VPU adds; keeps the accumulator a single vreg-pair.
        return jnp.sum(vals.reshape(block_rows // SUBLANES, SUBLANES, LANES),
                       axis=0)

    def kernel(x_ref, y_ref, out_ref, acc_ref):
        i = pl.program_id(1)

        @pl.when(i == 0)
        def _():
            acc_ref[...] = jnp.zeros_like(acc_ref)

        x = x_ref[...].astype(jnp.float32)
        y = y_ref[...].astype(jnp.float32)
        s = jnp.sin((x - y) * half)
        v = apply_p(two * s * s)

        if mask_needed:
            tile_idx = pl.program_id(0) * tiles_per_split + i
            is_full = (tile_idx + 1) * block_rows <= rows

            @pl.when(is_full)
            def _():
                acc_ref[...] = acc_ref[...] + reduce_tile(v)

            @pl.when(jnp.logical_not(is_full))
            def _():
                # Select (not multiply) so NaN/Inf garbage in the ragged tail
                # or clamped overflow tiles cannot leak into the sum.
                row = lax.broadcasted_iota(jnp.int32, (block_rows, LANES), 0)
                global_row = tile_idx * block_rows + row
                vm = jnp.where(global_row < rows, v, np.float32(0.0))
                acc_ref[...] = acc_ref[...] + reduce_tile(vm)
        else:
            acc_ref[...] = acc_ref[...] + reduce_tile(v)

        @pl.when(i == pl.num_programs(1) - 1)
        def _():
            out_ref[0, 0] = jnp.sum(acc_ref[...])

    return kernel


def cosine_loss(x, y, p=1, degrees=False, scale=1.0, block_rows=None):
    assert x.shape == y.shape, "x and y must have identical shapes"
    total = int(np.prod(x.shape))
    itemsize = int(np.dtype(x.dtype).itemsize)

    kind = _device_kind()
    num_cores = _num_tensorcores(kind)
    vmem_cap = _vmem_cap(kind)

    # Stream inputs in their source dtype; the f32 cast happens in-kernel.
    xf = x.reshape(-1)
    yf = y.reshape(-1)

    # Pad only to a LANES multiple so the flat data views as (rows, 128).
    # Identical pad values give d == 0 -> zero contribution; the mean divides
    # by the true element count.  Common case (total % 128 == 0) copies nothing.
    padded = _round_up(total, LANES)
    if padded != total:
        xf = jnp.pad(xf, (0, padded - total))
        yf = jnp.pad(yf, (0, padded - total))

    rows = padded // LANES
    x2 = xf.reshape(rows, LANES)
    y2 = yf.reshape(rows, LANES)

    if block_rows is None:
        block_rows = _default_block_rows(kind, itemsize)
    block_rows = max(SUBLANES, (int(block_rows) // SUBLANES) * SUBLANES)
    block_rows = min(block_rows, _round_up(rows, SUBLANES))
    # Halve until the VMEM footprint estimate fits this generation's cap.
    while (block_rows > 8 * SUBLANES
           and _vmem_estimate(block_rows, itemsize) > vmem_cap):
        block_rows = max(SUBLANES, (block_rows // 2 // SUBLANES) * SUBLANES)

    row_tiles = pl.cdiv(rows, block_rows)
    num_splits = min(num_cores, row_tiles)
    tiles_per_split = pl.cdiv(row_tiles, num_splits)
    mask_needed = (num_splits * tiles_per_split * block_rows) != rows

    def in_map(c, i):
        t = c * tiles_per_split + i
        # Clamp so overflow tiles re-read a valid tile (their contribution is
        # masked to zero inside the kernel) -> DMA always stays in-bounds.
        return (jnp.minimum(t, row_tiles - 1), 0)

    kernel = _make_kernel(p, bool(degrees), block_rows, tiles_per_split, rows,
                          mask_needed)

    vmem_limit = int(min(max(_vmem_estimate(block_rows, itemsize), 32 << 20),
                         vmem_cap))

    flops_per_elem = 6 + (int(p) - 1 if isinstance(p, int) and 1 <= p <= 4 else 2)
    cost = pl.CostEstimate(
        flops=flops_per_elem * total,
        transcendentals=total,
        bytes_accessed=2 * total * itemsize + num_splits * 4,
    )

    partials = pl.pallas_call(
        kernel,
        out_shape=jax.ShapeDtypeStruct((num_splits, 1), jnp.float32),
        grid_spec=pltpu.PrefetchScalarGridSpec(
            num_scalar_prefetch=0,
            grid=(num_splits, tiles_per_split),
            in_specs=[
                pl.BlockSpec((block_rows, LANES), in_map),
                pl.BlockSpec((block_rows, LANES), in_map),
            ],
            out_specs=pl.BlockSpec(
                (1, 1), lambda c, i: (c, 0), memory_space=pltpu.SMEM
            ),
            scratch_shapes=[pltpu.VMEM((SUBLANES, LANES), jnp.float32)],
        ),
        compiler_params=pltpu.CompilerParams(
            dimension_semantics=("parallel", "arbitrary"),
            vmem_limit_bytes=vmem_limit,
        ),
        cost_estimate=cost,
    )(x2, y2)

    # mean * scale  (sum of per-core partials / true element count * scale).
    return jnp.sum(partials) * jnp.float32(float(scale) / total)


if __name__ == "__main__":
    key = jax.random.PRNGKey(0)
    kx, ky, kx3, ky3 = jax.random.split(key, 4)

    # Small NCHW-like shape consistent with the module's forward.
    shape = (2, 4, 16, 16)
    x = jax.random.normal(kx, shape, dtype=jnp.float32)
    y = jax.random.normal(ky, shape, dtype=jnp.float32)

    # Module defaults: p=1, degrees=False, scale=1.
    loss = jax.block_until_ready(cosine_loss(x, y, p=1, degrees=False, scale=1.0))
    ref = jnp.mean((1.0 - jnp.cos(x - y)) ** 1) * 1.0
    assert jnp.allclose(loss, ref, rtol=1e-5, atol=1e-5), (loss, ref)

    # p=2, scale=3 path (repeated-multiply lowering).
    loss2 = jax.block_until_ready(cosine_loss(x, y, p=2, degrees=False, scale=3.0))
    ref2 = jnp.mean((1.0 - jnp.cos(x - y)) ** 2) * 3.0
    assert jnp.allclose(loss2, ref2, rtol=1e-5, atol=1e-5), (loss2, ref2)

    # p=4 path (two squarings).
    loss2b = jax.block_until_ready(cosine_loss(x, y, p=4, degrees=False, scale=1.0))
    ref2b = jnp.mean((1.0 - jnp.cos(x - y)) ** 4)
    assert jnp.allclose(loss2b, ref2b, rtol=1e-5, atol=1e-6), (loss2b, ref2b)

    # degrees=True path (deg2rad folded into the half-angle factor).
    loss3 = jax.block_until_ready(cosine_loss(x, y, p=1, degrees=True, scale=1.0))
    ref3 = jnp.mean(1.0 - jnp.cos(jnp.deg2rad(x) - jnp.deg2rad(y)))
    assert jnp.allclose(loss3, ref3, rtol=1e-4, atol=1e-6), (loss3, ref3)

    # Ragged size (not a multiple of 128): exercises LANE pad + gated masking.
    shape_r = (3, 5, 7)
    xr = jax.random.normal(kx3, shape_r, dtype=jnp.float32)
    yr = jax.random.normal(ky3, shape_r, dtype=jnp.float32)
    loss4 = jax.block_until_ready(cosine_loss(xr, yr))
    ref4 = jnp.mean(1.0 - jnp.cos(xr - yr))
    assert jnp.allclose(loss4, ref4, rtol=1e-5, atol=1e-5), (loss4, ref4)

    # bf16 inputs (in-kernel cast, doubled block_rows sizing path).
    xb = x.astype(jnp.bfloat16)
    yb = y.astype(jnp.bfloat16)
    loss5 = jax.block_until_ready(cosine_loss(xb, yb))
    ref5 = jnp.mean(1.0 - jnp.cos(xb.astype(jnp.float32) - yb.astype(jnp.float32)))
    assert jnp.allclose(loss5, ref5, rtol=1e-3, atol=1e-4), (loss5, ref5)

    print("KERNEL_OK")
</pallas_src>

<mosaic_0001>
module attributes {stable_mosaic.version = 11 : i64} {
  func.func @kernel(%arg0: i32, %arg1: i32, %arg2: memref<16x128xf32, #tpu.memory_space<vmem>>, %arg3: memref<16x128xf32, #tpu.memory_space<vmem>>, %arg4: memref<1x1xf32, #tpu.memory_space<smem>>, %arg5: memref<8x128xf32, #tpu.memory_space<vmem>>) attributes {dimension_semantics = [#tpu.dimension_semantics<parallel>, #tpu.dimension_semantics<arbitrary>], iteration_bounds = array<i64: 1, 1>, scalar_prefetch = 0 : i64, scratch_operands = 1 : i64, tpu.core_type = #tpu.core_type<tc>, window_params = [{transform_indices = @transform_0, window_bounds = array<i64: 16, 128>}, {transform_indices = @transform_1, window_bounds = array<i64: 16, 128>}, {transform_indices = @transform_2, window_bounds = array<i64: 1, 1>}]} {
    %c0_i32 = arith.constant 0 : i32
    %0 = arith.cmpi eq, %arg1, %c0_i32 : i32
    %1 = arith.extui %0 : i1 to i32
    %c0_i32_0 = arith.constant 0 : i32
    %2 = arith.cmpi ne, %1, %c0_i32_0 : i32
    scf.if %2 {
      %cst_12 = arith.constant 0.000000e+00 : f32
      %20 = vector.broadcast %cst_12 : f32 to vector<8x128xf32>
      %c0_13 = arith.constant 0 : index
      %c0_14 = arith.constant 0 : index
      %21 = vector.load %arg5[%c0_13, %c0_14] : memref<8x128xf32, #tpu.memory_space<vmem>>, vector<8x128xf32>
      tpu.vector_store %arg5[%c0_13, %c0_14], %20 {strides = array<i32>} : memref<8x128xf32, #tpu.memory_space<vmem>>, vector<8x128xf32>,
    } else {
    }
    %c0 = arith.constant 0 : index
    %c0_1 = arith.constant 0 : index
    %3 = vector.load %arg2[%c0, %c0_1] : memref<16x128xf32, #tpu.memory_space<vmem>>, vector<16x128xf32>
    %c0_2 = arith.constant 0 : index
    %c0_3 = arith.constant 0 : index
    %4 = vector.load %arg3[%c0_2, %c0_3] : memref<16x128xf32, #tpu.memory_space<vmem>>, vector<16x128xf32>
    %5 = arith.subf %3, %4 : vector<16x128xf32>
    %cst = arith.constant 5.000000e-01 : f32
    %6 = vector.broadcast %cst : f32 to vector<16x128xf32>
    %7 = arith.mulf %5, %6 : vector<16x128xf32>
    %8 = math.sin %7 : vector<16x128xf32>
    %cst_4 = arith.constant 2.000000e+00 : f32
    %9 = vector.broadcast %cst_4 : f32 to vector<16x128xf32>
    %10 = arith.mulf %9, %8 : vector<16x128xf32>
    %11 = arith.mulf %10, %8 : vector<16x128xf32>
    %c0_5 = arith.constant 0 : index
    %c0_6 = arith.constant 0 : index
    %12 = vector.load %arg5[%c0_5, %c0_6] : memref<8x128xf32, #tpu.memory_space<vmem>>, vector<8x128xf32>
    %13 = vector.shape_cast %11 : vector<16x128xf32> to vector<2x8x128xf32>
    %cst_7 = arith.constant dense<0.000000e+00> : vector<8x128xf32>
    %14 = vector.multi_reduction <add>, %13, %cst_7 [0] : vector<2x8x128xf32> to vector<8x128xf32>
    %15 = arith.addf %12, %14 : vector<8x128xf32>
    %c0_8 = arith.constant 0 : index
    %c0_9 = arith.constant 0 : index
    %16 = vector.load %arg5[%c0_8, %c0_9] : memref<8x128xf32, #tpu.memory_space<vmem>>, vector<8x128xf32>
    tpu.vector_store %arg5[%c0_8, %c0_9], %15 {strides = array<i32>} : memref<8x128xf32, #tpu.memory_space<vmem>>, vector<8x128xf32>,
    %c0_i32_10 = arith.constant 0 : i32
    %17 = arith.cmpi eq, %arg1, %c0_i32_10 : i32
    %18 = arith.extui %17 : i1 to i32
    %c0_i32_11 = arith.constant 0 : i32
    %19 = arith.cmpi ne, %18, %c0_i32_11 : i32
    scf.if %19 {
      %c0_12 = arith.constant 0 : index
      %c0_13 = arith.constant 0 : index
      %20 = vector.load %arg5[%c0_12, %c0_13] : memref<8x128xf32, #tpu.memory_space<vmem>>, vector<8x128xf32>
      %21 = vector.shape_cast %20 : vector<8x128xf32> to vector<1x8x128xf32>
      %cst_14 = arith.constant dense<0.000000e+00> : vector<1xf32>
      %22 = vector.multi_reduction <add>, %21, %cst_14 [1, 2] : vector<1x8x128xf32> to vector<1xf32>
      %23 = vector.shape_cast %22 : vector<1xf32> to vector<1x1x1xf32>
      %24 = vector.extract %23[0, 0, 0] : f32 from vector<1x1x1xf32>
      %c0_15 = arith.constant 0 : index
      %c0_16 = arith.constant 0 : index
      %25 = memref.load %arg4[%c0_15, %c0_16] : memref<1x1xf32, #tpu.memory_space<smem>>
      memref.store %24, %arg4[%c0_15, %c0_16] : memref<1x1xf32, #tpu.memory_space<smem>>
    } else {
    }
    return
  }
  func.func @transform_0(%arg0: i32, %arg1: i32) -> (i32, i32) {
    %c1_i32 = arith.constant 1 : i32
    %0 = arith.muli %arg0, %c1_i32 : i32
    %1 = arith.addi %0, %arg1 : i32
    %c0_i32 = arith.constant 0 : i32
    %2 = arith.minsi %1, %c0_i32 : i32
    %c0_i32_0 = arith.constant 0 : i32
    %c0_i32_1 = arith.constant 0 : i32
    return %2, %c0_i32_0 : i32, i32
  }
  func.func @transform_1(%arg0: i32, %arg1: i32) -> (i32, i32) {
    %c1_i32 = arith.constant 1 : i32
    %0 = arith.muli %arg0, %c1_i32 : i32
    %1 = arith.addi %0, %arg1 : i32
    %c0_i32 = arith.constant 0 : i32
    %2 = arith.minsi %1, %c0_i32 : i32
    %c0_i32_0 = arith.constant 0 : i32
    %c0_i32_1 = arith.constant 0 : i32
    return %2, %c0_i32_0 : i32, i32
  }
  func.func @transform_2(%arg0: i32, %arg1: i32) -> (i32, i32) {
    %c0_i32 = arith.constant 0 : i32
    %c0_i32_0 = arith.constant 0 : i32
    return %arg0, %c0_i32 : i32, i32
  }
}

</mosaic_0001>

<bundles_post_ra>
// kernel: tpu_custom_call.1
= control target key start
LH: loop header
LB: loop body
LE: loop exit
PB: predicated region body
PF: predicated region fallthrough
CT: control target
= control target key end

     0   :  { %7 = vsyncpa [#allocation4], 0  ;;  %s527_s0 = inlined_call_operand.hbm [shape: f32[16,128], index: 0, kind: input, shape index: {}]   ;;  %s528_s1 = inlined_call_operand.hbm [shape: f32[16,128], index: 1, kind: input, shape index: {}]   ;;  %s529_s2 = inlined_call_operand.hbm [shape: f32[1,1], index: 2, kind: output, shape index: {}]  }
   0x1   :  { %8 = vsyncpa [#allocation7], 0 }
   0x2   :  { %9 = vsyncpa [#allocation5], 0  ;;  %s414_s9 = smov [#allocation3]  }
   0x3   :  { %s21_s10 = sshll.u32 %s414_s9, 4  ;;  %s22_s10 = int_to_ptr.vmem [resolvable:$true] %s21_s10 }
   0x4   :  { %s368_s11 = scalar_lea.vmem %s22_s10, 256  ;;  %p373_p1 = scmp.lt.s32.totalorder %s22_s10, %s22_s10 }
   0x5   :  { %p369_p0 = scmp.ne.s32.totalorder %s22_s10, %s368_s11  ;;  %p374_p2 = scmp.lt.s32.totalorder %s368_s11, %s368_s11 }
   0x7   :  { %p375_p3 = por %p374_p2, %p373_p1 }
   0x9   :  { %p376_p4 = pnand %p375_p3, %p369_p0 }
   0xb   :  { %379 = shalt.err (!%p376_p4)
}
   0xc   :  { %s415_s12 = smov 128   ;;  %s416_s13 = smov 8  }
   0xd   :  { %27 = dma.hbm_to_vmem [thread:$0]  %s527_s0, 256, %s22_s10, [#allocation4], %s415_s12, %s415_s12, %s416_s13  }
   0xe   :  { %s417_s16 = smov [#allocation6]  }
   0xf   :  { %s39_s17 = sshll.u32 %s417_s16, 4  ;;  %s40_s17 = int_to_ptr.vmem [resolvable:$true] %s39_s17 }
  0x10   :  { %s388_s18 = scalar_lea.vmem %s40_s17, 256  ;;  %p393_p6 = scmp.lt.s32.totalorder %s40_s17, %s40_s17 }
  0x11   :  { %p389_p5 = scmp.ne.s32.totalorder %s40_s17, %s388_s18  ;;  %p394_p7 = scmp.lt.s32.totalorder %s388_s18, %s388_s18 }
  0x13   :  { %p395_p8 = por %p394_p7, %p393_p6 }
  0x15   :  { %p396_p9 = pnand %p395_p8, %p389_p5 }
  0x17   :  { %399 = shalt.err (!%p396_p9)
}
  0x18   :  { %45 = dma.hbm_to_vmem [thread:$0]  %s528_s1, 256, %s40_s17, [#allocation7], %s415_s12, %s415_s12, %s416_s13  }
  0x19   :  { %408 = dma.done.wait [#allocation4], 256  }
  0x1a   :  { %409 = vsyncadd [#allocation4], 4294967040 }
  0x1b   :  { %410 = dma.done.wait [#allocation7], 256  }
  0x1c   :  { %411 = vsyncadd [#allocation7], 4294967040  ;;  %v65_v0 = vld [vmem:[#allocation3] sm:$0xff]  ;;  %v66_v1 = vld [vmem:[#allocation3 + $0x8] sm:$0xff]  ;;  %v418_v30 = vmov 683565275  }
  0x1d   :  { %v67_v2 = vld [vmem:[#allocation6] sm:$0xff]  ;;  %v68_v3 = vld [vmem:[#allocation6 + $0x8] sm:$0xff]  ;;  %v419_v32 = vmov 2475754826   ;;  %v420_v34 = vmov 2131351028  }
  0x1e   :  { %v69_v4 = vsub.f32 %v65_v0, %v67_v2  ;;  %v70_v5 = vsub.f32 %v66_v1, %v68_v3  ;;  %v421_v36 = vmov 2102212464   ;;  %v422_v38 = vmov 920167782   ;;  %s424_s1 = smov [#allocation8]  }
  0x1f   :  { %v423_v46 = vmov 1326507024  }
  0x20   :  { %v446_v6 = vmul.f32 0.5, %v69_v4  ;;  %v448_v7 = vmul.f32 0.5, %v70_v5 }
  0x22   :  { %v73_v8 = vand.u32 2147483647, %v446_v6  ;;  %v76_v9 = vand.u32 2139095040, %v446_v6  ;;  %v177_v10 = vand.u32 2147483647, %v448_v7  ;;  %v180_v11 = vand.u32 2139095040, %v448_v7 }
  0x23   :  { %vm75_vm14 = vcmp.lt.s32.totalorder %v446_v6, 0 }
  0x24   :  { %v77_v12 = vshrl.u32 %v76_v9, 23  ;;  %v80_v13 = vand.u32 8388607, %v73_v8  ;;  %v181_v14 = vshrl.u32 %v180_v11, 23  ;;  %v184_v15 = vand.u32 8388607, %v177_v10 }
  0x25   :  { %vm509_vm15 = vcmp.le.f32.partialorder %v73_v8, 0.7853982 }
  0x26   :  { %v323_v16 = vadd.s32 4294967169, %v77_v12  ;;  %v327_v17 = vadd.s32 4294967169, %v181_v14  ;;  %v81_v19 = vor.u32 8388608, %v80_v13  ;;  %v185_v20 = vor.u32 8388608, %v184_v15 }
  0x28   :  { %v83_v18 = vadd.s32 1, %v323_v16  ;;  %v187_v21 = vadd.s32 1, %v327_v17  ;;  %v458_v26 = vshll.u32 %v81_v19, 8  ;;  %v460_v28 = vshll.u32 %v185_v20, 8 }
  0x2a   :  { %vm84_vm0 = vcmp.gt.s32.totalorder %v83_v18, 0  ;;  %vm188_vm1 = vcmp.gt.s32.totalorder %v187_v21, 0 }
  0x2b   :  { %v85_v22 = vsel %vm84_vm0, %v83_v18, 0  ;;  %v189_v25 = vsel %vm188_vm1, %v187_v21, 0  ;;  %vm179_vm0 = vcmp.lt.s32.totalorder %v448_v7, 0  ;;  %vm178_vm1 = vcmp.le.f32.partialorder %v177_v10, 0.7853982 }
  0x2c   :  { %v86_v23 = vshrl.u32 %v85_v22, 5  ;;  %v87_v24 = vand.u32 31, %v85_v22  ;;  %v191_v27 = vand.u32 31, %v189_v25  ;;  %v462_v40 = vshrl.u32 %v189_v25, 5 }
  0x2e   :  { %v88_v29 = vsub.s32 32, %v87_v24  ;;  %v90_v31 = vshll.u32 %v418_v30, %v87_v24  ;;  %v93_v33 = vshll.u32 %v419_v32, %v87_v24  ;;  %v96_v35 = vshll.u32 %v420_v34, %v87_v24 }
  0x2f   :  { %v99_v37 = vshll.u32 %v421_v36, %v87_v24  ;;  %v102_v39 = vshll.u32 %v422_v38, %v87_v24  ;;  %vm105_vm2 = vcmp.lt.s32.totalorder %v86_v23, 1  ;;  %vm106_vm3 = vcmp.lt.s32.totalorder %v86_v23, 2 }
  0x30   :  { %v89_v41 = vshrl.u32 %v418_v30, %v88_v29  ;;  %v91_v42 = vshrl.u32 %v419_v32, %v88_v29  ;;  %v94_v43 = vshrl.u32 %v420_v34, %v88_v29  ;;  %v97_v44 = vshrl.u32 %v421_v36, %v88_v29 }
  0x31   :  { %v100_v45 = vshrl.u32 %v422_v38, %v88_v29  ;;  %v103_v47 = vshrl.u32 %v423_v46, %v88_v29  ;;  %vm108_vm4 = vcmp.lt.s32.totalorder %v86_v23, 4  ;;  %v192_v51 = vsub.s32 32, %v191_v27 }
  0x32   :  { %v92_v48 = vor.u32 %v91_v42, %v90_v31  ;;  %v95_v49 = vor.u32 %v94_v43, %v93_v33  ;;  %v98_v50 = vor.u32 %v97_v44, %v96_v35  ;;  %vm107_vm5 = vcmp.lt.s32.totalorder %v86_v23, 3 }
  0x33   :  { %v101_v52 = vor.u32 %v100_v45, %v99_v37  ;;  %v104_v53 = vor.u32 %v103_v47, %v102_v39  ;;  %v194_v54 = vshll.u32 %v418_v30, %v191_v27  ;;  %v197_v62 = vshll.u32 %v419_v32, %v191_v27 }
  0x34   :  { %v109_v55 = vsel %vm105_vm2, %v89_v41, %v92_v48  ;;  %v110_v56 = vsel %vm108_vm4, %v98_v50, 2102212464  ;;  %v113_v57 = vsel %vm105_vm2, %v92_v48, %v95_v49  ;;  %v117_v58 = vsel %vm105_vm2, %v95_v49, %v98_v50 }
  0x35   :  { %v111_v59 = vsel %vm107_vm5, %v95_v49, %v110_v56  ;;  %v114_v60 = vsel %vm108_vm4, %v101_v52, 920167782  ;;  %v118_v61 = vsel %vm108_vm4, %v104_v53, 1326507024  ;;  %v193_v1 = vshrl.u32 %v418_v30, %v192_v51 }
  0x36   :  { %v115_v63 = vsel %vm107_vm5, %v98_v50, %v114_v60  ;;  %v119_v0 = vsel %vm107_vm5, %v101_v52, %v118_v61  ;;  %v195_v2 = vshrl.u32 %v419_v32, %v192_v51  ;;  %v112_v3 = vsel %vm106_vm3, %v109_v55, %v111_v59 }
  0x37   :  { %v116_v4 = vsel %vm106_vm3, %v113_v57, %v115_v63  ;;  %v120_v5 = vsel %vm106_vm3, %v117_v58, %v119_v0  ;;  %v198_v9 = vshrl.u32 %v420_v34, %v192_v51  ;;  %v200_v17 = vshll.u32 %v420_v34, %v191_v27 }
  0x38   :  { %v471_v11 = vmul.u32.u64.low %v458_v26, %v120_v5  ;;  %v472_v12 = vmul.u32.u64.high %v458_v26, %v120_v5, %v471_v11  ;;  %v475_v13 = vmul.u32.u64.low %v458_v26, %v116_v4  ;;  %v476_v14 = vmul.u32.u64.high %v458_v26, %v116_v4, %v475_v13 }
  0x39   :  { %v196_v15 = vor.u32 %v195_v2, %v194_v54  ;;  %v199_v16 = vor.u32 %v198_v9, %v197_v62  ;;  %v201_v18 = vshrl.u32 %v421_v36, %v192_v51  ;;  %v203_v19 = vshll.u32 %v421_v36, %v191_v27 }
  0x3a   :  { %v204_v20 = vshrl.u32 %v422_v38, %v192_v51  ;;  %v206_v21 = vshll.u32 %v422_v38, %v191_v27  ;;  %v207_v22 = vshrl.u32 %v423_v46, %v192_v51  ;;  %v128_v23 = vmul.u32 %v458_v26, %v112_v3 }
  0x3b   :  { %v202_v24 = vor.u32 %v201_v18, %v200_v17  ;;  %vm209_vm6 = vcmp.lt.s32.totalorder %v462_v40, 1  ;;  %vm210_vm7 = vcmp.lt.s32.totalorder %v462_v40, 2  ;;  %vm130_vm8 = vc.u32 %v472_v12, %v475_v13 }
  0x3c   :  { %v131_v25 = vadd.s32 1, %v476_v14  ;;  %v205_v29 = vor.u32 %v204_v20, %v203_v19  ;;  %vm211_vm9 = vcmp.lt.s32.totalorder %v462_v40, 3  ;;  %v208_v30 = vor.u32 %v207_v22, %v206_v21 }
  0x3d   :  { %vm212_vm10 = vcmp.lt.s32.totalorder %v462_v40, 4  ;;  %v213_v31 = vsel %vm209_vm6, %v193_v1, %v196_v15  ;;  %v217_v27 = vsel %vm209_vm6, %v196_v15, %v199_v16  ;;  %v221_v34 = vsel %vm209_vm6, %v199_v16, %v202_v24 }
  0x3e   :  { %v132_v32 = vsel %vm130_vm8, %v131_v25, %v476_v14  ;;  %v214_v26 = vsel %vm212_vm10, %v202_v24, 2102212464  ;;  %v218_v33 = vsel %vm212_vm10, %v205_v29, 920167782  ;;  %v222_v38 = vsel %vm212_vm10, %v208_v30, 1326507024 }
  0x3f   :  { %v133_v35 = vadd.s32 %v132_v32, %v128_v23  ;;  %v215_v36 = vsel %vm211_vm9, %v199_v16, %v214_v26  ;;  %v219_v37 = vsel %vm211_vm9, %v202_v24, %v218_v33  ;;  %v223_v42 = vsel %vm211_vm9, %v205_v29, %v222_v38 }
  0x40   :  { %v216_v39 = vsel %vm210_vm7, %v213_v31, %v215_v36  ;;  %v220_v41 = vsel %vm210_vm7, %v217_v27, %v219_v37  ;;  %v224_v44 = vsel %vm210_vm7, %v221_v34, %v223_v42  ;;  %v129_v63 = vadd.s32 %v475_v13, %v472_v12 }
  0x41   :  { %v134_v43 = vadd.s32 536870912, %v133_v35  ;;  %v493_v45 = vmul.u32.u64.low %v460_v28, %v220_v41  ;;  %v494_v46 = vmul.u32.u64.high %v460_v28, %v220_v41, %v493_v45  ;;  %v232_v50 = vmul.u32 %v460_v28, %v216_v39 }
  0x42   :  { %v497_v47 = vmul.u32.u64.low %v460_v28, %v224_v44  ;;  %v498_v48 = vmul.u32.u64.high %v460_v28, %v224_v44, %v497_v47  ;;  %vm165_vm5 = vweird.f32 %v446_v6  ;;  %vm269_vm9 = vweird.f32 %v448_v7 }
  0x43   :  { %v135_v49 = vshrl.u32 %v134_v43, 30  ;;  %v235_v52 = vadd.s32 1, %v494_v46 }
  0x44   :  { %vm234_vm11 = vc.u32 %v498_v48, %v493_v45  ;;  %v233_v19 = vadd.s32 %v493_v45, %v498_v48 }
  0x45   :  { %v136_v51 = vshll.u32 %v135_v49, 30  ;;  %v236_v40 = vsel %vm234_vm11, %v235_v52, %v494_v46  ;;  %v159_v24 = vsub.s32 4, %v135_v49 }
  0x46   :  { %v237_v54 = vadd.s32 %v236_v40, %v232_v50 }
  0x47   :  { %v137_v53 = vsub.s32 %v133_v35, %v136_v51  ;;  %v160_v33 = vsel %vm75_vm14, %v159_v24, %v135_v49 }
  0x48   :  { %v238_v56 = vadd.s32 536870912, %v237_v54  ;;  %v162_v8 = vsel %vm509_vm15, 0, %v160_v33 }
  0x49   :  { %v139_v55 = vsub.s32 0, %v137_v53  ;;  %v166_v41 = vadd.s32 3, %v162_v8 }
  0x4a   :  { %v239_v58 = vshrl.u32 %v238_v56, 30 }
  0x4b   :  { %v324_v57 = vmin.u32 %v139_v55, %v137_v53  ;;  %v167_v46 = vand.u32 3, %v166_v41 }
  0x4c   :  { %v240_v60 = vshll.u32 %v239_v58, 30  ;;  %v263_v39 = vsub.s32 4, %v239_v58 }
  0x4d   :  { %v141_v59 = vclz %v324_v57  ;;  %vm172_vm2 = vcmp.eq.s32.totalorder %v167_v46, 2  ;;  %vm169_vm3 = vcmp.eq.s32.totalorder %v167_v46, 0  ;;  %vm168_vm4 = vcmp.lt.s32.totalorder %v167_v46, 2 }
  0x4e   :  { %v241_v62 = vsub.s32 %v237_v54, %v240_v60  ;;  %v264_v44 = vsel %vm179_vm0, %v263_v39, %v239_v58 }
  0x4f   :  { %v325_v61 = vadd.s32 4294967294, %v141_v59  ;;  %v266_v47 = vsel %vm178_vm1, 0, %v264_v44 }
  0x50   :  { %v243_v0 = vsub.s32 0, %v241_v62  ;;  %v270_v51 = vadd.s32 3, %v266_v47 }
  0x51   :  { %vm326_vm12 = vcmp.lt.s32.totalorder %v325_v61, 0 }
  0x52   :  { %v144_v28 = vsel %vm326_vm12, 0, %v325_v61  ;;  %v328_v4 = vmin.u32 %v243_v0, %v241_v62  ;;  %v271_v10 = vand.u32 3, %v270_v51 }
  0x53   :  { %v145_v1 = vsub.s32 32, %v144_v28  ;;  %v146_v2 = vshll.u32 %v137_v53, %v144_v28  ;;  %v149_v3 = vsub.s32 4294967266, %v144_v28 }
  0x54   :  { %v245_v11 = vclz %v328_v4  ;;  %vm276_vm6 = vcmp.eq.s32.totalorder %v271_v10, 2  ;;  %vm273_vm7 = vcmp.eq.s32.totalorder %v271_v10, 0  ;;  %vm272_vm8 = vcmp.lt.s32.totalorder %v271_v10, 2 }
  0x55   :  { %v147_v5 = vshrl.u32 %v129_v63, %v145_v1  ;;  %v150_v9 = vadd.s32 127, %v149_v3 }
  0x56   :  { %v329_v16 = vadd.s32 4294967294, %v245_v11 }
  0x57   :  { %v148_v14 = vor.u32 %v147_v5, %v146_v2  ;;  %v151_v15 = vshll.u32 %v150_v9, 23 }
  0x58   :  { %vm330_vm13 = vcmp.lt.s32.totalorder %v329_v16, 0 }
  0x59   :  { %v152_v17 = vor.u32 4788187, %v151_v15  ;;  %v155_v18 = vcvt.s32.f32 %v148_v14  ;;  %v248_v12 = vsel %vm330_vm13, 0, %v329_v16 }
  0x5a   :  { %v249_v13 = vsub.s32 32, %v248_v12  ;;  %v250_v21 = vshll.u32 %v241_v62, %v248_v12  ;;  %v253_v22 = vsub.s32 4294967266, %v248_v12 }
  0x5b   :  { %v153_v20 = vand.u32 2147483647, %v152_v17 }
  0x5c   :  { %v251_v25 = vshrl.u32 %v233_v19, %v249_v13  ;;  %v254_v29 = vadd.s32 127, %v253_v22 }
  0x5d   :  { %v156_v23 = vmul.f32 %v155_v18, %v153_v20 }
  0x5e   :  { %v252_v27 = vor.u32 %v251_v25, %v250_v21  ;;  %v255_v32 = vshll.u32 %v254_v29, 23 }
  0x5f   :  { %v157_v31 = vxor.u32 2147483648, %v156_v23 }
  0x60   :  { %v256_v35 = vor.u32 4788187, %v255_v32  ;;  %v259_v36 = vcvt.s32.f32 %v252_v27 }
  0x61   :  { %v158_v26 = vsel %vm75_vm14, %v157_v31, %v156_v23 }
  0x62   :  { %v161_v34 = vsel %vm509_vm15, %v446_v6, %v158_v26  ;;  %v257_v37 = vand.u32 2147483647, %v256_v35 }
  0x63   :  { %352 = vcosq.f32 %v161_v34 }
  0x64   :  { %354 = vsinq.f32 %v161_v34  ;;  %v260_v38 = vmul.f32 %v259_v36, %v257_v37 }
  0x66   :  { %v261_v42 = vxor.u32 2147483648, %v260_v38 }
  0x68   :  { %v262_v43 = vsel %vm179_vm0, %v261_v42, %v260_v38 }
  0x69   :  { %v265_v45 = vsel %vm178_vm1, %v448_v7, %v262_v43 }
  0x6a   :  { %356 = vcosq.f32 %v265_v45 }
  0x6b   :  { %358 = vsinq.f32 %v265_v45 }
  0x70   :  { %v353_v48 = vpop.eup %352 }
  0x71   :  { %v355_v49 = vpop.eup %354  ;;  %v173_v50 = vxor.u32 2147483648, %v353_v48 }
  0x72   :  { %v170_v52 = vxor.u32 2147483648, %v355_v49 }
  0x73   :  { %v174_v53 = vsel %vm172_vm2, %v173_v50, %v355_v49 }
  0x74   :  { %v171_v40 = vsel %vm169_vm3, %v353_v48, %v170_v52 }
  0x75   :  { %v175_v54 = vsel %vm168_vm4, %v171_v40, %v174_v53 }
  0x76   :  { %v176_v56 = vsel %vm165_vm5, nan, %v175_v54 }
  0x77   :  { %v357_v55 = vpop.eup %356  ;;  %v281_v61 = vmul.f32 2.0, %v176_v56 }
  0x78   :  { %v359_v57 = vpop.eup %358  ;;  %v277_v58 = vxor.u32 2147483648, %v357_v55 }
  0x79   :  { %v274_v59 = vxor.u32 2147483648, %v359_v57  ;;  %v283_v1 = vmul.f32 %v281_v61, %v176_v56 }
  0x7a   :  { %v278_v60 = vsel %vm276_vm6, %v277_v58, %v359_v57 }
  0x7b   :  { %v275_v62 = vsel %vm273_vm7, %v357_v55, %v274_v59 }
  0x7c   :  { %v279_v63 = vsel %vm272_vm8, %v275_v62, %v278_v60 }
  0x7d   :  { %v280_v28 = vsel %vm269_vm9, nan, %v279_v63 }
  0x7e   :  { %v282_v0 = vmul.f32 2.0, %v280_v28 }
  0x80   :  { %v284_v2 = vmul.f32 %v282_v0, %v280_v28 }
  0x82   :  { %v286_v6 = vadd.f32 %v284_v2, %v283_v1 }
  0x84   :  { %293 = vadd.xlane.f32.xlu0 %v286_v6 }
 0x10d   :  { %v294_v3 = vpop.xlane.xlu0 %293 }
 0x10e   :  { %v295_v4 = vrot.slane %v294_v3, 4 }
 0x110   :  { %v296_v5 = vadd.f32 %v295_v4, %v294_v3 }
 0x112   :  { %v297_v9 = vrot.slane %v296_v5, 2 }
 0x114   :  { %v298_v11 = vadd.f32 %v297_v9, %v296_v5 }
 0x116   :  { %v299_v14 = vrot.slane %v298_v11, 1 }
 0x118   :  { %v300_v15 = vadd.f32 %v299_v14, %v298_v11 }
 0x11a   :  { %339 = vpush %v300_v15 }
 0x14b   :  { %s340_s0 = spop %339 }
 0x14c   :  { %303 = sst [smem:[#allocation8]] %s340_s0 }
 0x14d   :  { %311 = dma.smem_to_hbm %s424_s1, 16, %s529_s2, [#allocation5]  }
 0x14e   :  { %412 = dma.done.wait [#allocation5], 16  }
 0x14f   :  { %413 = vsyncadd [#allocation5], 4294967280 }
 0x150   :  { %315 = sfence }
 0x151   :  { %316 = vsyncpa [#allocation4], 1 }
 0x152   :  { %317 = vsyncpa [#allocation7], 1 }
 0x153   :  { %318 = vsyncpa [#allocation5], 1 }

</bundles_post_ra>
